<compile_context>
chip_gen: v7x
topology: tpu7x:2x2x1
jax: 0.10.0
libtpu: 0.0.40
codegen_flags: <defaults>
</compile_context>

<pallas_src>
import functools

import jax
import jax.numpy as jnp
from jax import lax
from jax.experimental import pallas as pl
from jax.experimental.pallas import tpu as pltpu

_MiB = 1024 * 1024


def _round_up(x, m):
    return ((x + m - 1) // m) * m


def _tensorcores_per_chip():
    try:
        kind = jax.devices()[0].device_kind.lower()
    except Exception:
        return 1
    return 2 if ("v7" in kind or "tpu7" in kind) else 1


# --------------------------------------------------------------------------
# Kernel 1: item head -> log-probs + per-row neg-LL partials (fused)
# --------------------------------------------------------------------------
def _item_head_kernel(h_ref, wt_ref, t_ref,            # inputs
                      logp_ref, negll_ref,             # outputs
                      m_sc, l_sc, wdot_sc, tsum_sc, lse_sc,   # scratch
                      *, n_valid, tn, fused, needs_mask):
    # h_ref:     (tb, D)  bf16 last-token hidden states
    # wt_ref:    (D, tn)  bf16 item weight tile (pre-transposed)
    # t_ref:     (tb, tn) bf16 multinomial targets
    # logp_ref:  fused: (tb, N_pad) resident row-block; else (tb, tn) tile
    # negll_ref: (tb, 1)  per-row -sum(logp * target) partials
    p = pl.program_id(1)
    j = pl.program_id(2)
    nj = pl.num_programs(2)

    # MXU matmul on native bf16 operands, f32 accumulation.
    s = jnp.dot(h_ref[...], wt_ref[...], preferred_element_type=jnp.float32)

    if fused:
        # Stream raw scores into the resident (tb, N_pad) output block using
        # static-slice stores (one pl.when branch per item tile; only one runs
        # per grid step) -- avoids dynamic lane-dim stores entirely.
        nn = logp_ref.shape[1] // tn
        for jj in range(nn):
            @pl.when(j == jj)
            def _(jj=jj):
                logp_ref[:, jj * tn:(jj + 1) * tn] = s

    @pl.when(p == 0)
    def _accumulate():
        @pl.when(j == 0)
        def _():
            m_sc[...] = jnp.full_like(m_sc, -jnp.inf)
            l_sc[...] = jnp.zeros_like(l_sc)
            wdot_sc[...] = jnp.zeros_like(wdot_sc)
            tsum_sc[...] = jnp.zeros_like(tsum_sc)

        tgt = t_ref[...].astype(jnp.float32)
        wdot_sc[...] += jnp.sum(s * tgt, axis=-1, keepdims=True)
        tsum_sc[...] += jnp.sum(tgt, axis=-1, keepdims=True)

        def lse_update(s_val):
            m_prev = m_sc[...]
            m_new = jnp.maximum(m_prev, jnp.max(s_val, axis=-1, keepdims=True))
            l_sc[...] = (l_sc[...] * jnp.exp(m_prev - m_new)
                         + jnp.sum(jnp.exp(s_val - m_new), axis=-1,
                                   keepdims=True))
            m_sc[...] = m_new

        if needs_mask:
            # Only the last item tile has padded columns: gate the mask work.
            @pl.when(j < nj - 1)
            def _():
                lse_update(s)

            @pl.when(j == nj - 1)
            def _():
                col = j * tn + lax.broadcasted_iota(jnp.int32, s.shape, 1)
                lse_update(jnp.where(col < n_valid, s, jnp.float32(-1e30)))
        else:
            lse_update(s)

        @pl.when(j == nj - 1)
        def _finalize():
            lse = m_sc[...] + jnp.log(l_sc[...])
            lse_sc[...] = lse
            # sum_n logp * t = sum_n (s - lse) * t = wdot - lse * tsum
            negll_ref[...] = -(wdot_sc[...] - lse * tsum_sc[...])
            if fused:
                # In-place finalize over the resident block: logp = s - lse.
                logp_ref[...] = logp_ref[...] - lse

    if not fused:
        # 2-pass fallback: pass 1 recomputes s (cheap MXU) and writes logp.
        @pl.when(p == 1)
        def _write_logp():
            logp_ref[...] = s - lse_sc[...]


# --------------------------------------------------------------------------
# Tiling plan + weight preparation (cacheable by the caller)
# --------------------------------------------------------------------------
def _plan_item_head(batch, num_items, emb_dim, *, tb_max=128, tn_max=4096,
                    max_fused_tiles=32, vmem_budget_bytes=36 * _MiB):
    B, N, D = batch, num_items, emb_dim
    tn = min(tn_max, _round_up(N, 128))
    N_pad = _round_up(N, tn)

    tb = min(tb_max, _round_up(B, 16))          # bf16 sublane tile is (16,128)
    # v7x has 2 TensorCores/chip: ensure the "parallel" batch axis has >= 2
    # blocks; single-TC v5e/v6e keep nb == 1 to avoid re-streaming W^T.
    if (_tensorcores_per_chip() >= 2 and _round_up(B, 16) > 16
            and _round_up(B, tb) // tb < 2):
        tb = _round_up((B + 1) // 2, 16)
    B_pad = _round_up(B, tb)

    def _stream_bytes(tb_, tn_):
        # double-buffered bf16 input streams + small f32 scratch rows
        return 2 * (D * tn_ + tb_ * tn_ + tb_ * D) * 2 + 5 * tb_ * 128 * 4

    # Prefer the fused single-pass kernel (logp row-block resident in VMEM:
    # one HBM write of the (B, N) slab, single weight stream per batch tile).
    fused = ((N_pad // tn) <= max_fused_tiles
             and _stream_bytes(tb, tn) + tb * N_pad * 4 <= vmem_budget_bytes)
    if not fused:
        # 2-pass recompute: logp streamed per (tb, tn) tile; shrink tn to fit.
        while tn > 128 and (_stream_bytes(tb, tn) + 2 * tb * tn * 4
                            > vmem_budget_bytes):
            tn = _round_up(tn // 2, 128)
        N_pad = _round_up(N, tn)

    footprint = _stream_bytes(tb, tn) + (tb * N_pad * 4 if fused
                                         else 2 * tb * tn * 4)
    return dict(tb=tb, tn=tn, B_pad=B_pad, N_pad=N_pad, fused=fused,
                footprint=int(footprint))


def prepare_item_head_weight(item_emb, plan, dtype=jnp.bfloat16):
    """Transpose + cast + pad the tied item-head weight once (cache me)."""
    N = item_emb.shape[0]
    w_t = item_emb.T.astype(dtype)                           # (D, N)
    if plan["N_pad"] != N:
        w_t = jnp.pad(w_t, ((0, 0), (0, plan["N_pad"] - N)))
    return w_t


# --------------------------------------------------------------------------
# Item recommendation head: log_softmax(h @ W^T) + multinomial neg-LL
# --------------------------------------------------------------------------
def item_recommend_head_pallas(last_hidden, target_ids, item_emb, *,
                               plan=None, w_t=None, tb_max=128, tn_max=4096):
    """last_hidden: (B, D); target_ids: (B, N); item_emb: (N, D)."""
    B, D = last_hidden.shape
    N = item_emb.shape[0]
    if plan is None:
        plan = _plan_item_head(B, N, D, tb_max=tb_max, tn_max=tn_max)
    if w_t is None:
        w_t = prepare_item_head_weight(item_emb, plan)

    tb, tn = plan["tb"], plan["tn"]
    B_pad, N_pad, fused = plan["B_pad"], plan["N_pad"], plan["fused"]

    h = last_hidden.astype(w_t.dtype)
    # targets are 0/1 multinomial counts -> exact in bf16; halves HBM traffic
    tgt = target_ids.astype(jnp.bfloat16)
    if B_pad != B:
        h = jnp.pad(h, ((0, B_pad - B), (0, 0)))
        tgt = jnp.pad(tgt, ((0, B_pad - B), (0, 0)))
    if N_pad != N:
        tgt = jnp.pad(tgt, ((0, 0), (0, N_pad - N)))

    nb, nn = B_pad // tb, N_pad // tn
    npass = 1 if fused else 2

    kernel = functools.partial(_item_head_kernel, n_valid=N, tn=tn,
                               fused=fused, needs_mask=(N_pad != N))

    if fused:
        logp_spec = pl.BlockSpec((tb, N_pad), lambda i, p, j: (i, 0))
    else:
        # pass 0: stay on block (i,0) (never written); pass 1: write (i,j).
        logp_spec = pl.BlockSpec((tb, tn), lambda i, p, j: (i, p * j))

    cp_kwargs = dict(dimension_semantics=("parallel", "arbitrary", "arbitrary"))
    if plan.get("footprint", 0) > 12 * _MiB:
        # v5e default scoped VMEM is 16 MiB -> raise explicitly for big tiles,
        # but stay well under v7x's 64 MiB physical VMEM.
        cp_kwargs["vmem_limit_bytes"] = int(min(48 * _MiB,
                                                plan["footprint"] * 1.5))

    logp, negll_rows = pl.pallas_call(
        kernel,
        out_shape=(jax.ShapeDtypeStruct((B_pad, N_pad), jnp.float32),
                   jax.ShapeDtypeStruct((B_pad, 1), jnp.float32)),
        grid_spec=pltpu.PrefetchScalarGridSpec(
            num_scalar_prefetch=0,
            grid=(nb, npass, nn),
            in_specs=[
                pl.BlockSpec((tb, D), lambda i, p, j: (i, 0)),            # h
                pl.BlockSpec((D, tn), lambda i, p, j: (0, j)),            # W^T
                pl.BlockSpec((tb, tn), lambda i, p, j: (i, j * (1 - p))),  # t
            ],
            out_specs=[logp_spec,
                       pl.BlockSpec((tb, 1), lambda i, p, j: (i, 0))],
            scratch_shapes=[
                pltpu.VMEM((tb, 1), jnp.float32),   # running max m
                pltpu.VMEM((tb, 1), jnp.float32),   # running sum-exp l
                pltpu.VMEM((tb, 1), jnp.float32),   # sum(s * t)
                pltpu.VMEM((tb, 1), jnp.float32),   # sum(t)
                pltpu.VMEM((tb, 1), jnp.float32),   # finalized lse
            ],
        ),
        compiler_params=pltpu.CompilerParams(**cp_kwargs),
    )(h, w_t, tgt)

    neg_ll = jnp.sum(negll_rows[:B, 0]) / jnp.float32(B)
    return logp[:B, :N], neg_ll


# --------------------------------------------------------------------------
# Kernel 2: MSELoss(reduction='sum') regularizer (lane-dense, ~1 MiB blocks)
# --------------------------------------------------------------------------
def _mse_sum_kernel(a_ref, b_ref, out_ref):
    @pl.when(pl.program_id(0) == 0)
    def _():
        out_ref[...] = jnp.zeros_like(out_ref)
    d = a_ref[...].astype(jnp.float32) - b_ref[...].astype(jnp.float32)
    part = jnp.sum(d * d, axis=-1, keepdims=True)          # (tr, 1)
    out_ref[...] += jnp.sum(part, axis=0, keepdims=True)   # (1, 1)


def mse_sum_pallas(a, b, *, lane=512, tr_max=512):
    af = a.reshape(-1).astype(jnp.float32)
    bf = b.reshape(-1).astype(jnp.float32)
    n = af.shape[0]
    n_pad = _round_up(n, lane)
    if n_pad != n:
        af = jnp.pad(af, (0, n_pad - n))
        bf = jnp.pad(bf, (0, n_pad - n))
    rows = n_pad // lane
    tr = min(tr_max, _round_up(rows, 8))
    rows_pad = _round_up(rows, tr)
    a2 = af.reshape(rows, lane)
    b2 = bf.reshape(rows, lane)
    if rows_pad != rows:
        a2 = jnp.pad(a2, ((0, rows_pad - rows), (0, 0)))
        b2 = jnp.pad(b2, ((0, rows_pad - rows), (0, 0)))

    out = pl.pallas_call(
        _mse_sum_kernel,
        out_shape=jax.ShapeDtypeStruct((1, 1), jnp.float32),
        grid_spec=pltpu.PrefetchScalarGridSpec(
            num_scalar_prefetch=0,
            grid=(rows_pad // tr,),
            in_specs=[pl.BlockSpec((tr, lane), lambda i: (i, 0)),
                      pl.BlockSpec((tr, lane), lambda i: (i, 0))],
            out_specs=pl.BlockSpec((1, 1), lambda i: (0, 0)),
        ),
        compiler_params=pltpu.CompilerParams(
            dimension_semantics=("arbitrary",)),
    )(a2, b2)
    return out[0, 0]


# --------------------------------------------------------------------------
# Minimal GPT-style base model (plain-JAX glue; external to this module)
# --------------------------------------------------------------------------
def _layer_norm(x, g, b, eps=1e-5):
    mu = jnp.mean(x, axis=-1, keepdims=True)
    var = jnp.var(x, axis=-1, keepdims=True)
    return (x - mu) / jnp.sqrt(var + eps) * g + b


class SimpleGPTBase:
    """Token (user+item) embeddings + positions + one transformer block."""

    def __init__(self, key, num_users, num_items, embedding_dim, max_len):
        self.num_users = num_users
        self.num_items = num_items
        self.embedding_dim = embedding_dim
        self.model_dtype = jnp.float32
        D = embedding_dim
        ks = jax.random.split(key, 8)
        s = 0.02
        self.user_emb = s * jax.random.normal(ks[0], (num_users, D), jnp.float32)
        self.item_emb = s * jax.random.normal(ks[1], (num_items, D), jnp.float32)
        self.wpe = s * jax.random.normal(ks[2], (max_len, D), jnp.float32)
        self.w_qkv = s * jax.random.normal(ks[3], (D, 3 * D), jnp.float32)
        self.w_o = s * jax.random.normal(ks[4], (D, D), jnp.float32)
        self.w_fc = s * jax.random.normal(ks[5], (D, 4 * D), jnp.float32)
        self.w_proj = s * jax.random.normal(ks[6], (4 * D, D), jnp.float32)
        self.ln1_g = jnp.ones((D,)); self.ln1_b = jnp.zeros((D,))
        self.ln2_g = jnp.ones((D,)); self.ln2_b = jnp.zeros((D,))
        self.lnf_g = jnp.ones((D,)); self.lnf_b = jnp.zeros((D,))

    def embed(self, ids):
        wte = jnp.concatenate([self.user_emb, self.item_emb], axis=0)
        return wte[ids]

    def __call__(self, input_ids, attention_mask=None):
        B, T = input_ids.shape
        D = self.embedding_dim
        x = self.embed(input_ids) + self.wpe[:T][None, :, :]

        h = _layer_norm(x, self.ln1_g, self.ln1_b)
        qkv = h @ self.w_qkv
        q, k, v = jnp.split(qkv, 3, axis=-1)
        att = (q @ jnp.swapaxes(k, -1, -2)) / jnp.sqrt(jnp.float32(D))
        causal = jnp.tril(jnp.ones((T, T), dtype=bool))
        key_mask = attention_mask.astype(bool)[:, None, :]
        full_mask = causal[None, :, :] & key_mask
        att = jnp.where(full_mask, att, jnp.float32(-1e9))
        att = jax.nn.softmax(att, axis=-1)
        x = x + (att @ v) @ self.w_o

        h2 = _layer_norm(x, self.ln2_g, self.ln2_b)
        x = x + jax.nn.gelu(h2 @ self.w_fc) @ self.w_proj

        hidden_states = _layer_norm(x, self.lnf_g, self.lnf_b)
        return (hidden_states,)


# --------------------------------------------------------------------------
# CollaborativeGPTwithItemRecommendHead.forward equivalent
# --------------------------------------------------------------------------
def collaborative_recommend_forward(base, input_ids, target_ids, attention_mask,
                                    regularize=False, lambda_V=None,
                                    main_ids=None, content_embeds=None,
                                    head_plan=None, item_head_weight_t=None):
    hidden_states = base(input_ids, attention_mask=attention_mask)[0]

    # Last non-pad token gather done in the wrapper (int32 index math) so the
    # head kernel only streams (B, D) instead of (B, T, D).
    last_idx = jnp.sum(attention_mask.astype(jnp.int32), axis=1) - 1
    last_hidden = jnp.take_along_axis(
        hidden_states, last_idx[:, None, None], axis=1)[:, 0, :]

    # item_head.weight is tied to base.item_embeddings.weight (no bias)
    item_log_probs, neg_ll = item_recommend_head_pallas(
        last_hidden, target_ids, base.item_emb,
        plan=head_plan, w_t=item_head_weight_t)

    if regularize:
        rec_embeds_prompt = base.embed(input_ids)
        rec_embeds_target = base.embed(main_ids)
        rec_embeds = jnp.concatenate((rec_embeds_prompt, rec_embeds_target), axis=1)
        regularize_loss = lambda_V * mse_sum_pallas(rec_embeds, content_embeds)
        neg_ll = neg_ll + regularize_loss
        return neg_ll, regularize_loss, item_log_probs
    return neg_ll, item_log_probs


# --------------------------------------------------------------------------
# Pure-JAX reference (silent correctness check)
# --------------------------------------------------------------------------
def _reference_forward(base, input_ids, target_ids, attention_mask,
                       lambda_V, main_ids, content_embeds):
    hidden = base(input_ids, attention_mask=attention_mask)[0]
    B = input_ids.shape[0]
    idx = jnp.sum(attention_mask, axis=1) - 1
    last_h = hidden[jnp.arange(B), idx, :]
    scores = last_h @ base.item_emb.T
    logp = jax.nn.log_softmax(scores, axis=-1)
    neg_ll = -jnp.mean(jnp.sum(logp * target_ids, axis=-1))
    rec = jnp.concatenate((base.embed(input_ids), base.embed(main_ids)), axis=1)
    reg = lambda_V * jnp.sum((rec - content_embeds) ** 2)
    return neg_ll + reg, reg, logp


if __name__ == "__main__":
    key = jax.random.PRNGKey(0)
    k_base, k_ids, k_len, k_tgt, k_main, k_cont = jax.random.split(key, 6)

    # num_items deliberately NOT a multiple of 128 so the item-axis padding /
    # masking path is exercised.
    num_users, num_items = 16, 250
    D = 32            # embedding_dim
    B, T = 16, 8      # batch, prompt length
    T_main = 8        # main_ids length
    vocab = num_users + num_items
    lambda_V = jnp.float32(0.01)

    base = SimpleGPTBase(k_base, num_users, num_items, D, max_len=T)

    input_ids = jax.random.randint(k_ids, (B, T), 0, vocab, dtype=jnp.int32)
    lengths = jax.random.randint(k_len, (B,), 2, T + 1, dtype=jnp.int32)
    attention_mask = (jnp.arange(T)[None, :] < lengths[:, None]).astype(jnp.int32)
    target_ids = jax.random.bernoulli(k_tgt, 0.05, (B, num_items)).astype(jnp.float32)
    main_ids = jax.random.randint(k_main, (B, T_main), num_users, vocab, dtype=jnp.int32)
    content_embeds = 0.02 * jax.random.normal(
        k_cont, (B, T + T_main, D), jnp.float32)

    # Plan + tied weight prepared once (small tn_max here so the multi-tile
    # online-LSE / resident-output path is exercised in this smoke test).
    plan = _plan_item_head(B, num_items, D, tn_max=128)
    w_t = prepare_item_head_weight(base.item_emb, plan)

    neg_ll, reg_loss, item_log_probs = collaborative_recommend_forward(
        base, input_ids, target_ids, attention_mask,
        regularize=True, lambda_V=lambda_V,
        main_ids=main_ids, content_embeds=content_embeds,
        head_plan=plan, item_head_weight_t=w_t)
    jax.block_until_ready((neg_ll, reg_loss, item_log_probs))

    # silent correctness check against pure-JAX reference (bf16 streams -> loose tol)
    r_negll, r_reg, r_logp = _reference_forward(
        base, input_ids, target_ids, attention_mask,
        lambda_V, main_ids, content_embeds)
    assert item_log_probs.shape == (B, num_items)
    assert jnp.allclose(item_log_probs, r_logp, atol=3e-2, rtol=1e-2)
    assert jnp.allclose(neg_ll, r_negll, atol=0.3, rtol=1e-2)
    assert jnp.allclose(reg_loss, r_reg, atol=1e-4, rtol=1e-3)

    # also exercise the 2-pass (recompute) fallback path of the head kernel
    hidden = base(input_ids, attention_mask=attention_mask)[0]
    last_idx = jnp.sum(attention_mask, axis=1) - 1
    last_h = jnp.take_along_axis(hidden, last_idx[:, None, None], axis=1)[:, 0, :]
    plan_tp = dict(plan, fused=False)
    logp_tp, negll_tp = item_recommend_head_pallas(
        last_h, target_ids, base.item_emb, plan=plan_tp, w_t=w_t)
    jax.block_until_ready((logp_tp, negll_tp))
    assert jnp.allclose(logp_tp, r_logp, atol=3e-2, rtol=1e-2)
    ref_negll_only = -jnp.mean(jnp.sum(r_logp * target_ids, axis=-1))
    assert jnp.allclose(negll_tp, ref_negll_only, atol=0.3, rtol=1e-2)

    print("KERNEL_OK")
</pallas_src>

<mosaic_0001>
module attributes {stable_mosaic.version = 11 : i64} {
  func.func @_item_head_kernel(%arg0: i32, %arg1: i32, %arg2: i32, %arg3: memref<16x32xbf16, #tpu.memory_space<vmem>>, %arg4: memref<32x128xbf16, #tpu.memory_space<vmem>>, %arg5: memref<16x128xbf16, #tpu.memory_space<vmem>>, %arg6: memref<16x256xf32, #tpu.memory_space<vmem>>, %arg7: memref<16x1xf32, #tpu.memory_space<vmem>>, %arg8: memref<16x1xf32, #tpu.memory_space<vmem>>, %arg9: memref<16x1xf32, #tpu.memory_space<vmem>>, %arg10: memref<16x1xf32, #tpu.memory_space<vmem>>, %arg11: memref<16x1xf32, #tpu.memory_space<vmem>>, %arg12: memref<16x1xf32, #tpu.memory_space<vmem>>) attributes {dimension_semantics = [#tpu.dimension_semantics<parallel>, #tpu.dimension_semantics<arbitrary>, #tpu.dimension_semantics<arbitrary>], iteration_bounds = array<i64: 1, 1, 2>, scalar_prefetch = 0 : i64, scratch_operands = 5 : i64, tpu.core_type = #tpu.core_type<tc>, window_params = [{transform_indices = @transform_0, window_bounds = array<i64: 16, 32>}, {transform_indices = @transform_1, window_bounds = array<i64: 32, 128>}, {transform_indices = @transform_2, window_bounds = array<i64: 16, 128>}, {transform_indices = @transform_3, window_bounds = array<i64: 16, 256>}, {transform_indices = @transform_4, window_bounds = array<i64: 16, 1>}]} {
    %c0 = arith.constant 0 : index
    %c0_0 = arith.constant 0 : index
    %0 = vector.load %arg3[%c0, %c0_0] : memref<16x32xbf16, #tpu.memory_space<vmem>>, vector<16x32xbf16>
    %c0_1 = arith.constant 0 : index
    %c0_2 = arith.constant 0 : index
    %1 = vector.load %arg4[%c0_1, %c0_2] : memref<32x128xbf16, #tpu.memory_space<vmem>>, vector<32x128xbf16>
    %cst = arith.constant dense<0.000000e+00> : vector<16x128xf32>
    %2 = tpu.matmul %0, %1, %cst {dimension_numbers = #tpu.dot_dimension_numbers<[1], [0], [0], [1], [0, 0, 1, 1], [], []>} : vector<16x32xbf16>, vector<32x128xbf16>, vector<16x128xf32> -> vector<16x128xf32>
    %c0_i32 = arith.constant 0 : i32
    %3 = arith.cmpi eq, %arg2, %c0_i32 : i32
    %4 = arith.extui %3 : i1 to i32
    %c0_i32_3 = arith.constant 0 : i32
    %5 = arith.cmpi ne, %4, %c0_i32_3 : i32
    scf.if %5 {
      %c0_7 = arith.constant 0 : index
      %c0_8 = arith.constant 0 : index
      %12 = vector.load %arg6[%c0_7, %c0_8] : memref<16x256xf32, #tpu.memory_space<vmem>>, vector<16x128xf32>
      tpu.vector_store %arg6[%c0_7, %c0_8], %2 {strides = array<i32>} : memref<16x256xf32, #tpu.memory_space<vmem>>, vector<16x128xf32>,
    } else {
    }
    %c1_i32 = arith.constant 1 : i32
    %6 = arith.cmpi eq, %arg2, %c1_i32 : i32
    %7 = arith.extui %6 : i1 to i32
    %c0_i32_4 = arith.constant 0 : i32
    %8 = arith.cmpi ne, %7, %c0_i32_4 : i32
    scf.if %8 {
      %c0_7 = arith.constant 0 : index
      %c128 = arith.constant 128 : index
      %12 = vector.load %arg6[%c0_7, %c128] : memref<16x256xf32, #tpu.memory_space<vmem>>, vector<16x128xf32>
      tpu.vector_store %arg6[%c0_7, %c128], %2 {strides = array<i32>} : memref<16x256xf32, #tpu.memory_space<vmem>>, vector<16x128xf32>,
    } else {
    }
    %c0_i32_5 = arith.constant 0 : i32
    %9 = arith.cmpi eq, %arg1, %c0_i32_5 : i32
    %10 = arith.extui %9 : i1 to i32
    %c0_i32_6 = arith.constant 0 : i32
    %11 = arith.cmpi ne, %10, %c0_i32_6 : i32
    scf.if %11 {
      %c0_i32_7 = arith.constant 0 : i32
      %12 = arith.cmpi eq, %arg2, %c0_i32_7 : i32
      %13 = arith.extui %12 : i1 to i32
      %c0_i32_8 = arith.constant 0 : i32
      %14 = arith.cmpi ne, %13, %c0_i32_8 : i32
      scf.if %14 {
        %cst_27 = arith.constant 0xFF800000 : f32
        %37 = vector.broadcast %cst_27 : f32 to vector<16x1xf32>
        %c0_28 = arith.constant 0 : index
        %c0_29 = arith.constant 0 : index
        %38 = vector.load %arg8[%c0_28, %c0_29] : memref<16x1xf32, #tpu.memory_space<vmem>>, vector<16x1xf32>
        tpu.vector_store %arg8[%c0_28, %c0_29], %37 {strides = array<i32>} : memref<16x1xf32, #tpu.memory_space<vmem>>, vector<16x1xf32>,
        %cst_30 = arith.constant 0.000000e+00 : f32
        %39 = vector.broadcast %cst_30 : f32 to vector<16x1xf32>
        %c0_31 = arith.constant 0 : index
        %c0_32 = arith.constant 0 : index
        %40 = vector.load %arg9[%c0_31, %c0_32] : memref<16x1xf32, #tpu.memory_space<vmem>>, vector<16x1xf32>
        tpu.vector_store %arg9[%c0_31, %c0_32], %39 {strides = array<i32>} : memref<16x1xf32, #tpu.memory_space<vmem>>, vector<16x1xf32>,
        %cst_33 = arith.constant 0.000000e+00 : f32
        %41 = vector.broadcast %cst_33 : f32 to vector<16x1xf32>
        %c0_34 = arith.constant 0 : index
        %c0_35 = arith.constant 0 : index
        %42 = vector.load %arg10[%c0_34, %c0_35] : memref<16x1xf32, #tpu.memory_space<vmem>>, vector<16x1xf32>
        tpu.vector_store %arg10[%c0_34, %c0_35], %41 {strides = array<i32>} : memref<16x1xf32, #tpu.memory_space<vmem>>, vector<16x1xf32>,
        %cst_36 = arith.constant 0.000000e+00 : f32
        %43 = vector.broadcast %cst_36 : f32 to vector<16x1xf32>
        %c0_37 = arith.constant 0 : index
        %c0_38 = arith.constant 0 : index
        %44 = vector.load %arg11[%c0_37, %c0_38] : memref<16x1xf32, #tpu.memory_space<vmem>>, vector<16x1xf32>
        tpu.vector_store %arg11[%c0_37, %c0_38], %43 {strides = array<i32>} : memref<16x1xf32, #tpu.memory_space<vmem>>, vector<16x1xf32>,
      } else {
      }
      %c0_9 = arith.constant 0 : index
      %c0_10 = arith.constant 0 : index
      %15 = vector.load %arg5[%c0_9, %c0_10] : memref<16x128xbf16, #tpu.memory_space<vmem>>, vector<16x128xbf16>
      %16 = arith.extf %15 : vector<16x128xbf16> to vector<16x128xf32>
      %c0_11 = arith.constant 0 : index
      %c0_12 = arith.constant 0 : index
      %17 = vector.load %arg10[%c0_11, %c0_12] : memref<16x1xf32, #tpu.memory_space<vmem>>, vector<16x1xf32>
      %18 = arith.mulf %2, %16 : vector<16x128xf32>
      %cst_13 = arith.constant dense<0.000000e+00> : vector<16xf32>
      %19 = vector.multi_reduction <add>, %18, %cst_13 [1] : vector<16x128xf32> to vector<16xf32>
      %20 = vector.shape_cast %19 : vector<16xf32> to vector<16x1xf32>
      %21 = arith.addf %17, %20 : vector<16x1xf32>
      %c0_14 = arith.constant 0 : index
      %c0_15 = arith.constant 0 : index
      %22 = vector.load %arg10[%c0_14, %c0_15] : memref<16x1xf32, #tpu.memory_space<vmem>>, vector<16x1xf32>
      tpu.vector_store %arg10[%c0_14, %c0_15], %21 {strides = array<i32>} : memref<16x1xf32, #tpu.memory_space<vmem>>, vector<16x1xf32>,
      %c0_16 = arith.constant 0 : index
      %c0_17 = arith.constant 0 : index
      %23 = vector.load %arg11[%c0_16, %c0_17] : memref<16x1xf32, #tpu.memory_space<vmem>>, vector<16x1xf32>
      %cst_18 = arith.constant dense<0.000000e+00> : vector<16xf32>
      %24 = vector.multi_reduction <add>, %16, %cst_18 [1] : vector<16x128xf32> to vector<16xf32>
      %25 = vector.shape_cast %24 : vector<16xf32> to vector<16x1xf32>
      %26 = arith.addf %23, %25 : vector<16x1xf32>
      %c0_19 = arith.constant 0 : index
      %c0_20 = arith.constant 0 : index
      %27 = vector.load %arg11[%c0_19, %c0_20] : memref<16x1xf32, #tpu.memory_space<vmem>>, vector<16x1xf32>
      tpu.vector_store %arg11[%c0_19, %c0_20], %26 {strides = array<i32>} : memref<16x1xf32, #tpu.memory_space<vmem>>, vector<16x1xf32>,
      %c1_i32_21 = arith.constant 1 : i32
      %28 = arith.cmpi slt, %arg2, %c1_i32_21 : i32
      %29 = arith.extui %28 : i1 to i32
      %c0_i32_22 = arith.constant 0 : i32
      %30 = arith.cmpi ne, %29, %c0_i32_22 : i32
      scf.if %30 {
        %c0_27 = arith.constant 0 : index
        %c0_28 = arith.constant 0 : index
        %37 = vector.load %arg8[%c0_27, %c0_28] : memref<16x1xf32, #tpu.memory_space<vmem>>, vector<16x1xf32>
        %cst_29 = arith.constant dense<0xFF800000> : vector<16xf32>
        %38 = vector.multi_reduction <maximumf>, %2, %cst_29 [1] : vector<16x128xf32> to vector<16xf32>
        %39 = vector.shape_cast %38 : vector<16xf32> to vector<16x1xf32>
        %40 = arith.maximumf %37, %39 : vector<16x1xf32>
        %c0_30 = arith.constant 0 : index
        %c0_31 = arith.constant 0 : index
        %41 = vector.load %arg9[%c0_30, %c0_31] : memref<16x1xf32, #tpu.memory_space<vmem>>, vector<16x1xf32>
        %42 = arith.subf %37, %40 : vector<16x1xf32>
        %43 = math.exp %42 : vector<16x1xf32>
        %44 = arith.mulf %41, %43 : vector<16x1xf32>
        %45 = vector.broadcast %40 : vector<16x1xf32> to vector<16x128xf32>
        %46 = arith.subf %2, %45 : vector<16x128xf32>
        %47 = math.exp %46 : vector<16x128xf32>
        %cst_32 = arith.constant dense<0.000000e+00> : vector<16xf32>
        %48 = vector.multi_reduction <add>, %47, %cst_32 [1] : vector<16x128xf32> to vector<16xf32>
        %49 = vector.shape_cast %48 : vector<16xf32> to vector<16x1xf32>
        %50 = arith.addf %44, %49 : vector<16x1xf32>
        %c0_33 = arith.constant 0 : index
        %c0_34 = arith.constant 0 : index
        %51 = vector.load %arg9[%c0_33, %c0_34] : memref<16x1xf32, #tpu.memory_space<vmem>>, vector<16x1xf32>
        tpu.vector_store %arg9[%c0_33, %c0_34], %50 {strides = array<i32>} : memref<16x1xf32, #tpu.memory_space<vmem>>, vector<16x1xf32>,
        %c0_35 = arith.constant 0 : index
        %c0_36 = arith.constant 0 : index
        %52 = vector.load %arg8[%c0_35, %c0_36] : memref<16x1xf32, #tpu.memory_space<vmem>>, vector<16x1xf32>
        tpu.vector_store %arg8[%c0_35, %c0_36], %40 {strides = array<i32>} : memref<16x1xf32, #tpu.memory_space<vmem>>, vector<16x1xf32>,
      } else {
      }
      %c1_i32_23 = arith.constant 1 : i32
      %31 = arith.cmpi eq, %arg2, %c1_i32_23 : i32
      %32 = arith.extui %31 : i1 to i32
      %c0_i32_24 = arith.constant 0 : i32
      %33 = arith.cmpi ne, %32, %c0_i32_24 : i32
      scf.if %33 {
        %c128_i32 = arith.constant 128 : i32
        %37 = arith.muli %arg2, %c128_i32 : i32
        %38 = tpu.iota {dimensions = array<i32: 1>} : vector<16x128xi32>
        %39 = vector.broadcast %37 : i32 to vector<16x128xi32>
        %40 = arith.addi %39, %38 : vector<16x128xi32>
        %c250_i32 = arith.constant 250 : i32
        %41 = vector.broadcast %c250_i32 : i32 to vector<16x128xi32>
        %42 = arith.cmpi slt, %40, %41 : vector<16x128xi32>
        %cst_27 = arith.constant -1.000000e+30 : f32
        %43 = vector.broadcast %cst_27 : f32 to vector<16x128xf32>
        %44 = arith.select %42, %2, %43 : vector<16x128xi1>, vector<16x128xf32>
        %c0_28 = arith.constant 0 : index
        %c0_29 = arith.constant 0 : index
        %45 = vector.load %arg8[%c0_28, %c0_29] : memref<16x1xf32, #tpu.memory_space<vmem>>, vector<16x1xf32>
        %cst_30 = arith.constant dense<0xFF800000> : vector<16xf32>
        %46 = vector.multi_reduction <maximumf>, %44, %cst_30 [1] : vector<16x128xf32> to vector<16xf32>
        %47 = vector.shape_cast %46 : vector<16xf32> to vector<16x1xf32>
        %48 = arith.maximumf %45, %47 : vector<16x1xf32>
        %c0_31 = arith.constant 0 : index
        %c0_32 = arith.constant 0 : index
        %49 = vector.load %arg9[%c0_31, %c0_32] : memref<16x1xf32, #tpu.memory_space<vmem>>, vector<16x1xf32>
        %50 = arith.subf %45, %48 : vector<16x1xf32>
        %51 = math.exp %50 : vector<16x1xf32>
        %52 = arith.mulf %49, %51 : vector<16x1xf32>
        %53 = vector.broadcast %48 : vector<16x1xf32> to vector<16x128xf32>
        %54 = arith.subf %44, %53 : vector<16x128xf32>
        %55 = math.exp %54 : vector<16x128xf32>
        %cst_33 = arith.constant dense<0.000000e+00> : vector<16xf32>
        %56 = vector.multi_reduction <add>, %55, %cst_33 [1] : vector<16x128xf32> to vector<16xf32>
        %57 = vector.shape_cast %56 : vector<16xf32> to vector<16x1xf32>
        %58 = arith.addf %52, %57 : vector<16x1xf32>
        %c0_34 = arith.constant 0 : index
        %c0_35 = arith.constant 0 : index
        %59 = vector.load %arg9[%c0_34, %c0_35] : memref<16x1xf32, #tpu.memory_space<vmem>>, vector<16x1xf32>
        tpu.vector_store %arg9[%c0_34, %c0_35], %58 {strides = array<i32>} : memref<16x1xf32, #tpu.memory_space<vmem>>, vector<16x1xf32>,
        %c0_36 = arith.constant 0 : index
        %c0_37 = arith.constant 0 : index
        %60 = vector.load %arg8[%c0_36, %c0_37] : memref<16x1xf32, #tpu.memory_space<vmem>>, vector<16x1xf32>
        tpu.vector_store %arg8[%c0_36, %c0_37], %48 {strides = array<i32>} : memref<16x1xf32, #tpu.memory_space<vmem>>, vector<16x1xf32>,
      } else {
      }
      %c1_i32_25 = arith.constant 1 : i32
      %34 = arith.cmpi eq, %arg2, %c1_i32_25 : i32
      %35 = arith.extui %34 : i1 to i32
      %c0_i32_26 = arith.constant 0 : i32
      %36 = arith.cmpi ne, %35, %c0_i32_26 : i32
      scf.if %36 {
        %c0_27 = arith.constant 0 : index
        %c0_28 = arith.constant 0 : index
        %37 = vector.load %arg8[%c0_27, %c0_28] : memref<16x1xf32, #tpu.memory_space<vmem>>, vector<16x1xf32>
        %c0_29 = arith.constant 0 : index
        %c0_30 = arith.constant 0 : index
        %38 = vector.load %arg9[%c0_29, %c0_30] : memref<16x1xf32, #tpu.memory_space<vmem>>, vector<16x1xf32>
        %39 = math.log %38 : vector<16x1xf32>
        %40 = arith.addf %37, %39 : vector<16x1xf32>
        %c0_31 = arith.constant 0 : index
        %c0_32 = arith.constant 0 : index
        %41 = vector.load %arg12[%c0_31, %c0_32] : memref<16x1xf32, #tpu.memory_space<vmem>>, vector<16x1xf32>
        tpu.vector_store %arg12[%c0_31, %c0_32], %40 {strides = array<i32>} : memref<16x1xf32, #tpu.memory_space<vmem>>, vector<16x1xf32>,
        %c0_33 = arith.constant 0 : index
        %c0_34 = arith.constant 0 : index
        %42 = vector.load %arg10[%c0_33, %c0_34] : memref<16x1xf32, #tpu.memory_space<vmem>>, vector<16x1xf32>
        %c0_35 = arith.constant 0 : index
        %c0_36 = arith.constant 0 : index
        %43 = vector.load %arg11[%c0_35, %c0_36] : memref<16x1xf32, #tpu.memory_space<vmem>>, vector<16x1xf32>
        %44 = arith.mulf %40, %43 : vector<16x1xf32>
        %45 = arith.subf %42, %44 : vector<16x1xf32>
        %cst_37 = arith.constant 0.000000e+00 : f32
        %46 = vector.broadcast %cst_37 : f32 to vector<16x1xf32>
        %47 = arith.subf %46, %45 : vector<16x1xf32>
        %c0_38 = arith.constant 0 : index
        %c0_39 = arith.constant 0 : index
        %48 = vector.load %arg7[%c0_38, %c0_39] : memref<16x1xf32, #tpu.memory_space<vmem>>, vector<16x1xf32>
        tpu.vector_store %arg7[%c0_38, %c0_39], %47 {strides = array<i32>} : memref<16x1xf32, #tpu.memory_space<vmem>>, vector<16x1xf32>,
        %c0_40 = arith.constant 0 : index
        %c0_41 = arith.constant 0 : index
        %49 = vector.load %arg6[%c0_40, %c0_41] : memref<16x256xf32, #tpu.memory_space<vmem>>, vector<16x256xf32>
        %50 = vector.broadcast %40 : vector<16x1xf32> to vector<16x256xf32>
        %51 = arith.subf %49, %50 : vector<16x256xf32>
        %c0_42 = arith.constant 0 : index
        %c0_43 = arith.constant 0 : index
        %52 = vector.load %arg6[%c0_42, %c0_43] : memref<16x256xf32, #tpu.memory_space<vmem>>, vector<16x256xf32>
        tpu.vector_store %arg6[%c0_42, %c0_43], %51 {strides = array<i32>} : memref<16x256xf32, #tpu.memory_space<vmem>>, vector<16x256xf32>,
      } else {
      }
    } else {
    }
    return
  }
  func.func @transform_0(%arg0: i32, %arg1: i32, %arg2: i32) -> (i32, i32) {
    %c0_i32 = arith.constant 0 : i32
    %c0_i32_0 = arith.constant 0 : i32
    return %arg0, %c0_i32 : i32, i32
  }
  func.func @transform_1(%arg0: i32, %arg1: i32, %arg2: i32) -> (i32, i32) {
    %c0_i32 = arith.constant 0 : i32
    %c0_i32_0 = arith.constant 0 : i32
    return %c0_i32, %arg2 : i32, i32
  }
  func.func @transform_2(%arg0: i32, %arg1: i32, %arg2: i32) -> (i32, i32) {
    %c1_i32 = arith.constant 1 : i32
    %0 = arith.subi %c1_i32, %arg1 : i32
    %1 = arith.muli %arg2, %0 : i32
    %c0_i32 = arith.constant 0 : i32
    return %arg0, %1 : i32, i32
  }
  func.func @transform_3(%arg0: i32, %arg1: i32, %arg2: i32) -> (i32, i32) {
    %c0_i32 = arith.constant 0 : i32
    %c0_i32_0 = arith.constant 0 : i32
    return %arg0, %c0_i32 : i32, i32
  }
  func.func @transform_4(%arg0: i32, %arg1: i32, %arg2: i32) -> (i32, i32) {
    %c0_i32 = arith.constant 0 : i32
    %c0_i32_0 = arith.constant 0 : i32
    return %arg0, %c0_i32 : i32, i32
  }
}

</mosaic_0001>

<bundles_post_ra>
// kernel: tpu_custom_call.1
= control target key start
LH: loop header
LB: loop body
LE: loop exit
PB: predicated region body
PF: predicated region fallthrough
CT: control target
= control target key end

     0   :  { %10 = vsyncpa [#allocation8], 0  ;;  %s1392_s0 = inlined_call_operand.hbm [shape: bf16[16,32], index: 0, kind: input, shape index: {}]   ;;  %s1393_s1 = inlined_call_operand.hbm [shape: bf16[32,256], index: 1, kind: input, shape index: {}]   ;;  %s1394_s2 = inlined_call_operand.hbm [shape: bf16[16,256], index: 2, kind: input, shape index: {}]   ;;  %s1395_s3 = inlined_call_operand.hbm [shape: f32[16,256], index: 3, kind: output, shape index: {0}]   ;;  %s1396_s4 = inlined_call_operand.vmem [shape: f32[16,1], index: 4, kind: output, shape index: {1}]  }
   0x1   :  { %11 = vsyncpa [#allocation11], 0 }
   0x2   :  { %13 = vsyncpa [#allocation11 + $0x1], 0 }
   0x3   :  { %14 = vsyncpa [#allocation9], 0  ;;  %s1106_s15 = smov 0   ;;  %s1108_s16 = smov 0  }
   0x4   :  { %s1110_s17 = smov 0   ;;  %s1112_s18 = smov 0  }
   0x5   :  { %s1114_s19 = smov 0   ;;  %s1116_s20 = smov 0  }
   0x6 LB: > { %s32_s21 = sadd.s32 1, %s1060_s19  ;;  %s72_s22 = sadd.s32 1, %s1052_s17  ;;  %s1064_s20 = sphi %s1116_s20, %s20_s20   ;;  %s1060_s19 = sphi %s1114_s19, %s1415_s19   ;;  %s1056_s18 = sphi %s1112_s18, %s1414_s18   ;;  %s1052_s17 = sphi %s1110_s17, %s1413_s17   ;;  %s1048_s16 = sphi %s1108_s16, %s1412_s16   ;;  %s1044_s15 = sphi %s1106_s15, %s1411_s15  }
   0x7   : > { %p33_p0 = scmp.ge.s32.totalorder %s32_s21, 2  ;;  %p79_p1 = scmp.ne.s32.totalorder %s1052_s17, %s1048_s16 }
   0x8   : > { %p80_p2 = scmp.eq.s32.totalorder %s1064_s20, 0  ;;  %p800_p5 = scmp.lt.s32.totalorder %s1064_s20, 2 }
   0x9   : > { %s1417_s21 = smov (%p33_p0, %s32_s21), 0  ;;  %s209_s25 = sand.u32 1, %s1064_s20  }
   0xa   : > { %p1143_p3 = por %p80_p2, %p79_p1  ;;  %s69_s24 = ssub.s32 %s1060_s19, %s1417_s21 }
   0xb   : > { %p70_p4 = scmp.eq.s32.totalorder %s69_s24, 0  ;;  %s211_s26 = sand.u32 1, %s1052_s17  }
   0xc   : > { %s737_s28 = sshll.u32 %s211_s26, 4  ;;  %s738_s29 = sshll.u32 %s1060_s19, 6 }
   0xd   : > { %s1153_s27 = scalar_select %p70_p4, %s1052_s17, %s72_s22  }
   0xe   : > { %s1161_s6 = scalar_lea.hbm %s1393_s1, %s738_s29  ;;  %s213_s7 = scalar_lea.vmem [#allocation10], %s737_s28 }
   0xf   : > { %s219_s8 = sshll.u32 %s213_s7, 4  ;;  %p1167_p6 = pnand %p800_p5, %p1143_p3  ;;  %s1163_s8 = int_to_ptr.vmem [resolvable:$true] %s219_s8 }
  0x10   : > { %s1171_s10 = sshll.u32 %s211_s26, 3  ;;  %s1173_s11 = scalar_lea.sflag [#allocation11], %s209_s25 }
  0x11   : > { %s892_s12 = scalar_lea.hbm %s1161_s6, 256  ;;  %p894_p8 = pneg %p1167_p6 }
  0x12   : > { %p893_p7 = scmp.ne.s32.totalorder %s1161_s6, %s892_s12  ;;  %s897_s22 = scalar_lea.hbm %s1393_s1, 512 }
  0x13   : > { %p898_p11 = scmp.lt.u32.totalorder %s1161_s6, %s1393_s1  ;;  %p899_p12 = scmp.lt.u32.totalorder %s897_s22, %s892_s12 }
  0x14   : > { %p895_p9 = pnand %p894_p8, %p893_p7  ;;  %p901_p0 = scmp.lt.u32.totalorder %s892_s12, %s1161_s6 }
  0x15   : > { %p900_p13 = por %p899_p12, %p898_p11 }
  0x16   : > { %p896_p10 = pneg %p895_p9 }
  0x17   : > { %p902_p1 = por %p901_p0, %p900_p13 }
  0x19   : > { %p903_p2 = pnand %p902_p1, %p896_p10 }
  0x1b   : > { %906 = shalt.err (!%p903_p2)
}
  0x1c   : > { %s907_s25 = scalar_lea.vmem %s1163_s8, 256  ;;  %s1066_s26 = smov [#allocation10]  }
  0x1d   : > { %p908_p3 = scmp.ne.s32.totalorder %s1163_s8, %s907_s25  ;;  %s912_s28 = sshll.u32 %s1066_s26, 4  ;;  %s913_s28 = int_to_ptr.vmem [resolvable:$false] %s912_s28 }
  0x1e   : > { %s914_s30 = scalar_lea.vmem %s913_s28, 512  ;;  %p915_p7 = scmp.lt.s32.totalorder %s1163_s8, %s913_s28 }
  0x1f   : > { %p910_p4 = pnand %p908_p3, %p894_p8  ;;  %p916_p9 = scmp.lt.s32.totalorder %s914_s30, %s907_s25 }
  0x21   : > { %p911_p5 = pneg %p910_p4  ;;  %p917_p11 = por %p916_p9, %p915_p7 }
  0x23   : > { %p918_p12 = pnand %p917_p11, %p911_p5 }
  0x25   : > { %921 = shalt.err (!%p918_p12)
}
  0x26   : > { %s1067_s5 = smov 128   ;;  %s1068_s7 = smov 64  }
  0x27   : > { %s1069_s12 = smov 4   ;;  %s1209_s22 = scalar_lea.hbm %s1394_s2, %s738_s29 }
  0x28   : > { %795 = dma.hbm_to_vmem [thread:$0]  (!%p1167_p6), %s1161_s6, 256, %s1163_s8, %s1173_s11, %s1067_s5, %s1068_s7, %s1069_s12  }
  0x29   : > { %s233_s23 = scalar_lea.vmem [#allocation12], %s1171_s10  ;;  %s1215_s25 = sadd.s32 4294967295, %s1064_s20  }
  0x2a   : > { %s244_s24 = sshll.u32 %s233_s23, 4  ;;  %p85_p10 = scmp.ne.s32.totalorder %s1048_s16, %s1044_s15  ;;  %s1212_s24 = int_to_ptr.vmem [resolvable:$true] %s244_s24 }
  0x2b   : > { %p1397_p13 = scmp.eq.s32.totalorder %s1215_s25, 0  ;;  %p734_p0 = scmp.ge.s32.totalorder %s1064_s20, 1 }
  0x2c   : > { %p180_p1 = scmp.lt.s32.totalorder %s1064_s20, 3  ;;  %s1070_s8 = smov [#allocation7]  }
  0x2d   : > { %p1224_p2 = por %p1397_p13, %p85_p10  ;;  %s1232_s10 = sshll.u32 %s1070_s8, 4  ;;  %s196_s10 = int_to_ptr.vmem [resolvable:$true] %s1232_s10 }
  0x2e   : > { %p1228_p3 = pnand %p734_p0, %p180_p1  ;;  %s922_s15 = scalar_lea.hbm %s1209_s22, 128 }
  0x2f   : > { %s1402_s29 = scalar_select %p1224_p2, 1, 0 }
  0x30   : > { %s1403_s6 = scalar_select %p1228_p3, 1, 0 }
  0x31   : > { %p923_p5 = scmp.ne.s32.totalorder %s1209_s22, %s922_s15  ;;  %s927_s30 = scalar_lea.hbm %s1394_s2, 256 }
  0x32   : > { %p928_p11 = scmp.lt.u32.totalorder %s1209_s22, %s1394_s2  ;;  %p929_p12 = scmp.lt.u32.totalorder %s927_s30, %s922_s15 }
  0x33   : > { %p925_p7 = pnand %p923_p5, %p894_p8  ;;  %p931_p0 = scmp.lt.u32.totalorder %s922_s15, %s1209_s22 }
  0x34   : > { %p930_p10 = por %p929_p12, %p928_p11 }
  0x35   : > { %p926_p9 = pneg %p925_p7 }
  0x36   : > { %p932_p1 = por %p931_p0, %p930_p10 }
  0x38   : > { %p933_p13 = pnand %p932_p1, %p926_p9 }
  0x3a   : > { %936 = shalt.err (!%p933_p13)
}
  0x3b   : > { %s937_s23 = scalar_lea.vmem %s1212_s24, 128  ;;  %s1071_s8 = smov [#allocation12]  }
  0x3c   : > { %p938_p5 = scmp.ne.s32.totalorder %s1212_s24, %s937_s23  ;;  %s942_s26 = sshll.u32 %s1071_s8, 4  ;;  %s943_s26 = int_to_ptr.vmem [resolvable:$false] %s942_s26 }
  0x3d   : > { %s944_s28 = scalar_lea.vmem %s943_s26, 256  ;;  %p945_p2 = scmp.lt.s32.totalorder %s1212_s24, %s943_s26 }
  0x3e   : > { %p940_p7 = pnand %p938_p5, %p894_p8  ;;  %p946_p11 = scmp.lt.s32.totalorder %s944_s28, %s937_s23 }
  0x40   : > { %p941_p4 = pneg %p940_p7  ;;  %p947_p12 = por %p946_p11, %p945_p2 }
  0x42   : > { %p948_p10 = pnand %p947_p12, %p941_p4 }
  0x44   : > { %951 = shalt.err (!%p948_p10)
}
  0x45   : > { %798 = dma.hbm_to_vmem [thread:$0]  (!%p1167_p6), %s1209_s22, 128, %s1212_s24, %s1173_s11, %s1067_s5, %s1068_s7, %s1069_s12  }
  0x46   : > { %p1404_p8 = scmp.eq.s32.totalorder %s1215_s25, 0  ;;  %p1405_p13 = pneg %p1228_p3 }
  0x47   : > { %s952_s13 = scalar_lea.hbm %s1392_s0, 128 }
  0x48   : > { %p1269_p9 = pnand %p1405_p13, %p1404_p8  ;;  %p953_p2 = scmp.ne.s32.totalorder %s1392_s0, %s952_s13 }
  0x49   : > { %p959_p1 = scmp.lt.u32.totalorder %s952_s13, %s1392_s0 }
  0x4a   : > { %p954_p4 = pneg %p1269_p9 }
  0x4c   : > { %p955_p6 = pnand %p954_p4, %p953_p2 }
  0x4e   : > { %p956_p0 = pneg %p955_p6 }
  0x50   : > { %p961_p5 = pnand %p959_p1, %p956_p0 }
  0x52   : > { %964 = shalt.err (!%p961_p5)
}
  0x53   : > { %s965_s22 = scalar_lea.vmem %s196_s10, 128  ;;  %p973_p10 = scmp.lt.s32.totalorder %s196_s10, %s196_s10 }
  0x54   : > { %p966_p7 = scmp.ne.s32.totalorder %s196_s10, %s965_s22  ;;  %p974_p8 = scmp.lt.s32.totalorder %s965_s22, %s965_s22 }
  0x56   : > { %p968_p11 = pnand %p966_p7, %p954_p4  ;;  %p975_p13 = por %p974_p8, %p973_p10 }
  0x58   : > { %p969_p12 = pneg %p968_p11 }
  0x5a   : > { %p976_p3 = pnand %p975_p13, %p969_p12 }
  0x5c   : > { %979 = shalt.err (!%p976_p3)
}
  0x5d   : > { %791 = dma.hbm_to_vmem [thread:$0]  (!%p1269_p9), %s1392_s0, 128, %s196_s10, [#allocation8], %s1068_s7, %s1068_s7, %s1069_s12  }
  0x5e   : > { %p1407_p2 = scmp.ne.s32.totalorder %s1403_s6, 0 }
  0x5f   : > { %p1408_p4 = scmp.eq.s32.totalorder (!%p1407_p2), %s1215_s25, 0 }
  0x60   : > { %256 = sbr.rel (%p1407_p2) target bundleno = 1421 (0x58d), region = 32 }
  0x67   : > { %1031 = dma.done.wait (%p1408_p4), [#allocation8], 128   ;;  %p1409_p6 = pmov %p1408_p4 }
  0x68   : > { %s262_s26 = sand.u32 1, %s1215_s25   ;;  %s264_s28 = sand.u32 1, %s1048_s16  }
  0x69   : > { %1033 = vsyncadd (%p1409_p6), [#allocation8], 4294967168  ;;  %s743_s15 = sshll.u32 %s264_s28, 4  ;;  %s263_s30 = scalar_lea.sflag [#allocation11], %s262_s26 }
  0x6a   : > { %s266_s9 = scalar_lea.vmem [#allocation10], %s743_s15  ;;  %p1410_p3 = scmp.ne.s32.totalorder %s1402_s29, 0 }
  0x6c   : > { %1035 = dma.done.wait (%p1410_p3), %s263_s30, 384  }
  0x6d   : > { %1037 = vsyncadd (%p1410_p3), %s263_s30, 4294966912  ;;  %s1304_s7 = sshll.u32 %s264_s28, 3  ;;  %v1072_v0 = vmov 0.0   ;;  %vm1073_vm0 = vmmov 0   ;;  %v865_v1 = vld [vmem:[%s266_s9] sm:$0xff]   ;;  %v866_v2 = vld [vmem:[%s266_s9 + $0x8] sm:$0xff]  }
  0x6e   : > { %768 = vmatprep.subr.bf16.mxu0 %v1072_v0  ;;  %772 = vmatprep.mubr.msk.bf16.mxu0 %vm1073_vm0, %v1072_v0  ;;  %v867_v3 = vld [vmem:[#allocation7] sm:$0xff]   ;;  %vm340_vm1 = vcmask 261120   ;;  %s275_s12 = scalar_lea.vmem [#allocation12], %s1304_s7  ;;  %p749_p9 = scmp.ne.s32.totalorder %s1056_s18, 0 }
  0x6f   : > { %769 = vmatpush3.bf16.msra.mxu0 %v865_v1 }
  0x70   : > { %770 = vmatprep.subr.bf16.mxu0 %v1072_v0 }
  0x73   : > { %771 = vmatpush3.bf16.msra.mxu0 %v866_v2 }
  0x76   : > { %773 = vmatmul.mubr.msk.bf16.vlgmr.msra.gmra.mrb[0].mxu0 %vm340_vm1, %v867_v3 }
 0x146   : > { %388 = sbr.rel (%p749_p9) target bundleno = 333 (0x14d), region = 48 }
 0x149   : > { %v1306_v4 = vpop.f32.mrb[0].mxu0 }
 0x14a   : > { %v774_v5 = vpop.f32.mrb[1].mxu0  ;;  %389 = vst [vmem:[#allocation13] sm:$0xff] (!%p749_p9), %v1306_v4 }
 0x14b   : > { %v1308_v6 = vpop.f32.mrb[2].mxu0 }
 0x14c   : > { %v775_v7 = vpop.f32.mrb[3].mxu0  ;;  %390 = vst [vmem:[#allocation13 + $0x10] sm:$0xff] (!%p749_p9), %v1308_v6 }
 0x14d PF: > { %p750_p0 = scmp.ne.s32.totalorder %s1056_s18, 1 }
 0x14e   : > { %395 = vst [vmem:[#allocation13 + $0x8] sm:$0xff] (!%p750_p0), %v1306_v4  ;;  %396 = vst [vmem:[#allocation13 + $0x18] sm:$0xff] (!%p750_p0), %v1308_v6 }
 0x14f   : > { %394 = sbr.rel (%p750_p0) target bundleno = 342 (0x156), region = 52 }
 0x156 PF: > { %403 = sbr.rel (%p749_p9) target bundleno = 349 (0x15d), region = 60  ;;  %vm404_vm2 = vcmask (!%p749_p9), 7168   ;;  %v1074_v8 = vmov (!%p749_p9), -inf   ;;  %v1075_v9 = vmov (!%p749_p9), 0.0  }
 0x157   : > { %405 = vst.msk [vmem:[#allocation2] sm:$0xff] (!%p749_p9), %vm404_vm2, %v1074_v8  ;;  %406 = vst.msk [vmem:[#allocation2 + $0x8] sm:$0xff] (!%p749_p9), %vm404_vm2, %v1074_v8 }
 0x158   : > { %407 = vst.msk [vmem:[#allocation3] sm:$0xff] (!%p749_p9), %vm404_vm2, %v1075_v9  ;;  %408 = vst.msk [vmem:[#allocation3 + $0x8] sm:$0xff] (!%p749_p9), %vm404_vm2, %v1075_v9 }
 0x159   : > { %409 = vst.msk [vmem:[#allocation4] sm:$0xff] (!%p749_p9), %vm404_vm2, %v1075_v9  ;;  %410 = vst.msk [vmem:[#allocation4 + $0x8] sm:$0xff] (!%p749_p9), %vm404_vm2, %v1075_v9 }
 0x15a   : > { %411 = vst.msk [vmem:[#allocation5] sm:$0xff] (!%p749_p9), %vm404_vm2, %v1075_v9  ;;  %412 = vst.msk [vmem:[#allocation5 + $0x8] sm:$0xff] (!%p749_p9), %vm404_vm2, %v1075_v9 }
 0x15d PF: > { %v762_v10 = vld [vmem:[%s275_s12] sm:$0xff]   ;;  %vm427_vm3 = vcmask 7168   ;;  %p752_p1 = scmp.ge.s32.totalorder %s1056_s18, 1 }
 0x15e   : > { %v763_v11 = vunpack.c.l.bf16 %v762_v10  ;;  %v764_v12 = vunpack.c.h.bf16 %v762_v10  ;;  %v1076_v27 = vmov (!%p752_p1), 0   ;;  %v444_v28 = vld [vmem:[#allocation2] sm:$0xff] (!%p752_p1)  ;;  %v445_v31 = vld [vmem:[#allocation2 + $0x8] sm:$0xff] (!%p752_p1) }
 0x15f   : > { %868 = vset.pattern.permute.xlu1 (!%p752_p1), %v1076_v27  ;;  %869 = vset.pattern.permute.xlu0 (!%p752_p1), %v1076_v27  ;;  %v452_v47 = vld [vmem:[#allocation3] sm:$0xff] (!%p752_p1)  ;;  %v453_v51 = vld [vmem:[#allocation3 + $0x8] sm:$0xff] (!%p752_p1) }
 0x160   : > { %432 = vadd.xlane.f32.xlu1 %v763_v11  ;;  %v419_v13 = vmul.f32 %v763_v11, %v1306_v4  ;;  %v420_v14 = vmul.f32 %v764_v12, %v1308_v6  ;;  %v417_v17 = vld [vmem:[#allocation4] sm:$0xff]  ;;  %v418_v23 = vld [vmem:[#allocation4 + $0x8] sm:$0xff] }
 0x161   : > { %v430_v15 = vld [vmem:[#allocation5] sm:$0xff]  ;;  %v431_v20 = vld [vmem:[#allocation5 + $0x8] sm:$0xff] }
 0x162   : > { %421 = vadd.xlane.f32.xlu0 %v419_v13 }
 0x164   : > { %434 = vadd.xlane.f32.xlu1 %v764_v12 }
 0x166   : > { %423 = vadd.xlane.f32.xlu0 %v420_v14 }
 0x16a   : > { %446 = vmax.xlane.f32.xlu0 (!%p752_p1), %v1306_v4 }
 0x16e   : > { %448 = vmax.xlane.f32.xlu0 (!%p752_p1), %v1308_v6 }
 0x1ed   : > { %v433_v16 = vpop.xlane.xlu1 %432 }
 0x1ee   : > { %v436_v18 = vadd.f32 %v433_v16, %v430_v15 }
 0x1ef   : > { %v422_v19 = vpop.xlane.xlu0 %421 }
 0x1f0   : > { %438 = vst.msk [vmem:[#allocation5] sm:$0xff] %vm427_vm3, %v436_v18  ;;  %v425_v21 = vadd.f32 %v422_v19, %v417_v17  ;;  %443 = sbr.rel (%p752_p1) target bundleno = 798 (0x31e), region = 64 }
 0x1f1   : > { %v435_v22 = vpop.xlane.xlu1 %434 }
 0x1f2   : > { %428 = vst.msk [vmem:[#allocation4] sm:$0xff] %vm427_vm3, %v425_v21  ;;  %v437_v24 = vadd.f32 %v435_v22, %v431_v20 }
 0x1f3   : > { %v424_v25 = vpop.xlane.xlu0 %423 }
 0x1f4   : > { %439 = vst.msk [vmem:[#allocation5 + $0x8] sm:$0xff] %vm427_vm3, %v437_v24  ;;  %v426_v26 = vadd.f32 %v424_v25, %v418_v23 }
 0x1f6   : > { %429 = vst.msk [vmem:[#allocation4 + $0x8] sm:$0xff] %vm427_vm3, %v426_v26 }
 0x1f7   : > { %v447_v29 = vpop.xlane.xlu0 %446 }
 0x1f8   : > { %v450_v30 = vmax.f32 %v444_v28, %v447_v29 }
 0x1fa   : > { %v454_v32 = vsub.f32 %v444_v28, %v450_v30  ;;  %486 = vst.msk [vmem:[#allocation2] sm:$0xff] %vm427_vm3, %v450_v30  ;;  %464 = vperm.xlu1 %868, %v450_v30  }
 0x1fb   : > { %v449_v33 = vpop.xlane.xlu0 %448 }
 0x1fc   : > { %v451_v34 = vmax.f32 %v445_v31, %v449_v33  ;;  %v456_v44 = vmul.f32 1.442695, %v454_v32 }
 0x1fe   : > { %v455_v35 = vsub.f32 %v445_v31, %v451_v34  ;;  %487 = vst.msk [vmem:[#allocation2 + $0x8] sm:$0xff] %vm427_vm3, %v451_v34  ;;  %469 = vperm.xlu1 %868, %v451_v34  }
 0x200   : > { %v458_v45 = vmul.f32 1.442695, %v455_v35 }
 0x279   : > { %v465_v36 = vpop.permute.xlu1 %464 }
 0x27a   : > { %v472_v37 = vsub.f32 %v1306_v4, %v465_v36 }
 0x27c   : > { %v474_v38 = vmul.f32 1.442695, %v472_v37 }
 0x27d   : > { %v470_v39 = vpop.permute.xlu1 %469 }
 0x27e   : > { %870 = vpow2.f32 %v474_v38  ;;  %v473_v40 = vsub.f32 %v1308_v6, %v470_v39 }
 0x280   : > { %v476_v41 = vmul.f32 1.442695, %v473_v40 }
 0x282   : > { %872 = vpow2.f32 %v476_v41 }
 0x283   : > { %874 = vpow2.f32 %v456_v44 }
 0x284   : > { %876 = vpow2.f32 %v458_v45 }
 0x288   : > { %v871_v42 = vpop.eup %870 }
 0x289   : > { %478 = vadd.xlane.f32.xlu0 %v871_v42 }
 0x28c   : > { %v873_v43 = vpop.eup %872 }
 0x28d   : > { %480 = vadd.xlane.f32.xlu1 %v873_v43  ;;  %v875_v46 = vpop.eup %874 }
 0x28e   : > { %v460_v48 = vmul.f32 %v875_v46, %v452_v47  ;;  %v877_v49 = vpop.eup %876 }
 0x28f   : > { %v461_v53 = vmul.f32 %v877_v49, %v453_v51 }
 0x316   : > { %v479_v50 = vpop.xlane.xlu0 %478 }
 0x317   : > { %v482_v52 = vadd.f32 %v479_v50, %v460_v48 }
 0x319   : > { %484 = vst.msk [vmem:[#allocation3] sm:$0xff] %vm427_vm3, %v482_v52 }
 0x31a   : > { %v481_v54 = vpop.xlane.xlu1 %480 }
 0x31b   : > { %v483_v55 = vadd.f32 %v481_v54, %v461_v53 }
 0x31d   : > { %485 = vst.msk [vmem:[#allocation3 + $0x8] sm:$0xff] %vm427_vm3, %v483_v55 }
 0x31e PF: > { %490 = sbr.rel (%p750_p0) target bundleno = 1395 (0x573), region = 68  ;;  %s754_s29 = sshll.u32 (!%p750_p0), %s1056_s18, 7  ;;  %v492_v56 = vlaneseq (!%p750_p0)  ;;  %v1077_v62 = vmov (!%p750_p0), 0   ;;  %v499_v63 = vld [vmem:[#allocation2] sm:$0xff] (!%p750_p0)  ;;  %v500_v2 = vld [vmem:[#allocation2 + $0x8] sm:$0xff] (!%p750_p0)  ;;  %v557_v32 = vld [vmem:[#allocation5] sm:$0xff] (!%p750_p0) }
 0x31f   : > { %v494_v57 = vstv (!%p750_p0), %s754_s29  ;;  %878 = vset.pattern.permute.xlu1 (!%p750_p0), %v1077_v62  ;;  %879 = vset.pattern.permute.xlu0 (!%p750_p0), %v1077_v62  ;;  %v567_v47 = vld [vmem:[#allocation13] sm:$0xff] (!%p750_p0)  ;;  %v568_v48 = vld [vmem:[#allocation13 + $0x8] sm:$0xff] (!%p750_p0)  ;;  %v569_v52 = vld [vmem:[#allocation13 + $0x10] sm:$0xff] (!%p750_p0) }
 0x320   : > { %v493_v58 = vand.u32 (!%p750_p0), 127, %v492_v56  ;;  %v507_v18 = vld [vmem:[#allocation3] sm:$0xff] (!%p750_p0)  ;;  %v555_v35 = vld [vmem:[#allocation4] sm:$0xff] (!%p750_p0) }
 0x321   : > { %v570_v53 = vld [vmem:[#allocation13 + $0x18] sm:$0xff] (!%p750_p0) }
 0x322   : > { %v495_v59 = vadd.s32 (!%p750_p0), %v494_v57, %v493_v58  ;;  %v558_v39 = vld [vmem:[#allocation5 + $0x8] sm:$0xff] (!%p750_p0) }
 0x324   : > { %vm496_vm4 = vcmp.lt.s32.totalorder (!%p750_p0), %v495_v59, 250  ;;  %v508_v22 = vld [vmem:[#allocation3 + $0x8] sm:$0xff] (!%p750_p0)  ;;  %v556_v42 = vld [vmem:[#allocation4 + $0x8] sm:$0xff] (!%p750_p0) }
 0x325   : > { %v497_v60 = vsel %vm496_vm4, %v1306_v4, -1e+30  ;;  %v498_v61 = vsel %vm496_vm4, %v1308_v6, -1e+30 }
 0x326   : > { %501 = vmax.xlane.f32.xlu0 %v497_v60 }
 0x32a   : > { %503 = vmax.xlane.f32.xlu0 %v498_v61 }
 0x3b3   : > { %v502_v0 = vpop.xlane.xlu0 %501 }
 0x3b4   : > { %v505_v1 = vmax.f32 %v499_v63, %v502_v0 }
 0x3b6   : > { %v509_v3 = vsub.f32 %v499_v63, %v505_v1  ;;  %541 = vst.msk [vmem:[#allocation2] sm:$0xff] %vm427_vm3, %v505_v1  ;;  %519 = vperm.xlu1 %878, %v505_v1  }
 0x3b7   : > { %v504_v5 = vpop.xlane.xlu0 %503 }
 0x3b8   : > { %v506_v7 = vmax.f32 %v500_v2, %v504_v5  ;;  %v511_v15 = vmul.f32 1.442695, %v509_v3 }
 0x3ba   : > { %v510_v8 = vsub.f32 %v500_v2, %v506_v7  ;;  %542 = vst.msk [vmem:[#allocation2 + $0x8] sm:$0xff] %vm427_vm3, %v506_v7  ;;  %524 = vperm.xlu1 %878, %v506_v7  }
 0x3bc   : > { %v513_v16 = vmul.f32 1.442695, %v510_v8 }
 0x3bd   : > { %v543_v31 = vld [vmem:[#allocation2] sm:$0xff] }
 0x3c1   : > { %v544_v38 = vld [vmem:[#allocation2 + $0x8] sm:$0xff] }
 0x435   : > { %v520_v4 = vpop.permute.xlu1 %519 }
 0x436   : > { %v527_v6 = vsub.f32 %v497_v60, %v520_v4 }
 0x438   : > { %v529_v9 = vmul.f32 1.442695, %v527_v6 }
 0x439   : > { %v525_v10 = vpop.permute.xlu1 %524 }
 0x43a   : > { %880 = vpow2.f32 %v529_v9  ;;  %v528_v11 = vsub.f32 %v498_v61, %v525_v10 }
 0x43c   : > { %v531_v12 = vmul.f32 1.442695, %v528_v11 }
 0x43e   : > { %882 = vpow2.f32 %v531_v12 }
 0x43f   : > { %884 = vpow2.f32 %v511_v15 }
 0x440   : > { %886 = vpow2.f32 %v513_v16 }
 0x444   : > { %v881_v13 = vpop.eup %880 }
 0x445   : > { %533 = vadd.xlane.f32.xlu0 %v881_v13 }
 0x448   : > { %v883_v14 = vpop.eup %882 }
 0x449   : > { %535 = vadd.xlane.f32.xlu1 %v883_v14  ;;  %v885_v17 = vpop.eup %884 }
 0x44a   : > { %v515_v19 = vmul.f32 %v885_v17, %v507_v18  ;;  %v887_v20 = vpop.eup %886 }
 0x44b   : > { %v516_v24 = vmul.f32 %v887_v20, %v508_v22 }
 0x4d2   : > { %v534_v21 = vpop.xlane.xlu0 %533 }
 0x4d3   : > { %v537_v23 = vadd.f32 %v534_v21, %v515_v19 }
 0x4d5   : > { %539 = vst.msk [vmem:[#allocation3] sm:$0xff] %vm427_vm3, %v537_v23 }
 0x4d6   : > { %v536_v25 = vpop.xlane.xlu1 %535 }
 0x4d7   : > { %v538_v26 = vadd.f32 %v536_v25, %v516_v24 }
 0x4d9   : > { %540 = vst.msk [vmem:[#allocation3 + $0x8] sm:$0xff] %vm427_vm3, %v538_v26 }
 0x4dc   : > { %v545_v27 = vld [vmem:[#allocation3] sm:$0xff] }
 0x4dd   : > { %888 = vlog2.f32 %v545_v27 }
 0x4e0   : > { %v546_v28 = vld [vmem:[#allocation3 + $0x8] sm:$0xff] }
 0x4e1   : > { %890 = vlog2.f32 %v546_v28 }
 0x4e7   : > { %v889_v29 = vpop.eup %888 }
 0x4e8   : > { %v548_v30 = vmul.f32 0.6931472, %v889_v29 }
 0x4ea   : > { %v551_v33 = vadd.f32 %v548_v30, %v543_v31 }
 0x4eb   : > { %v891_v34 = vpop.eup %890 }
 0x4ec   : > { %573 = vperm.xlu0 %879, %v551_v33   ;;  %v559_v36 = vmul.f32 %v557_v32, %v551_v33  ;;  %v550_v37 = vmul.f32 0.6931472, %v891_v34 }
 0x4ee   : > { %v561_v40 = vsub.f32 %v555_v35, %v559_v36  ;;  %v552_v41 = vadd.f32 %v550_v37, %v544_v38 }
 0x4f0   : > { %v563_v43 = vsub.f32 0.0, %v561_v40  ;;  %578 = vperm.xlu1 %878, %v552_v41   ;;  %v560_v44 = vmul.f32 %v558_v39, %v552_v41 }
 0x4f2   : > { %565 = vst.msk [vmem:[%s1396_s4] sm:$0xff] %vm427_vm3, %v563_v43  ;;  %v562_v45 = vsub.f32 %v556_v42, %v560_v44 }
 0x4f4   : > { %v564_v46 = vsub.f32 0.0, %v562_v45 }
 0x4f6   : > { %566 = vst.msk [vmem:[%s1396_s4 + $0x8] sm:$0xff] %vm427_vm3, %v564_v46 }
 0x56b   : > { %v574_v49 = vpop.permute.xlu0 %573 }
 0x56c   : > { %v581_v50 = vsub.f32 %v567_v47, %v574_v49  ;;  %v582_v51 = vsub.f32 %v568_v48, %v574_v49 }
 0x56e   : > { %585 = vst [vmem:[#allocation13] sm:$0xff] %v581_v50  ;;  %586 = vst [vmem:[#allocation13 + $0x8] sm:$0xff] %v582_v51 }
 0x56f   : > { %v579_v54 = vpop.permute.xlu1 %578 }
 0x570   : > { %v583_v55 = vsub.f32 %v569_v52, %v579_v54  ;;  %v584_v56 = vsub.f32 %v570_v53, %v579_v54 }
 0x572   : > { %587 = vst [vmem:[#allocation13 + $0x10] sm:$0xff] %v583_v55  ;;  %588 = vst [vmem:[#allocation13 + $0x18] sm:$0xff] %v584_v56 }
 0x573 PF: > { %p802_p5 = scmp.eq.s32.totalorder %s1215_s25, 1  ;;  %s1078_s14 = smov [#allocation13]  }
 0x574   : > { %s604_s23 = sshll.u32 %s1078_s14, 4  ;;  %s605_s23 = int_to_ptr.vmem [resolvable:$true] %s604_s23 }
 0x575   : > { %s980_s11 = scalar_lea.vmem %s605_s23, 512  ;;  %p987_p10 = scmp.lt.s32.totalorder %s605_s23, %s605_s23 }
 0x576   : > { %p981_p7 = scmp.ne.s32.totalorder %s605_s23, %s980_s11  ;;  %p988_p8 = scmp.lt.s32.totalorder %s980_s11, %s980_s11 }
 0x578   : > { %p982_p11 = pnand %p981_p7, %p802_p5  ;;  %p989_p13 = por %p988_p8, %p987_p10 }
 0x57a   : > { %p983_p12 = pneg %p982_p11 }
 0x57c   : > { %p990_p2 = pnand %p989_p13, %p983_p12 }
 0x57e   : > { %993 = shalt.err (!%p990_p2)
}
 0x57f   : > { %s994_s24 = scalar_lea.hbm %s1395_s3, 512 }
 0x580   : > { %p995_p4 = scmp.ne.s32.totalorder %s1395_s3, %s994_s24  ;;  %p1000_p9 = scmp.lt.u32.totalorder %s994_s24, %s1395_s3 }
 0x582   : > { %p996_p6 = pnand %p995_p4, %p802_p5 }
 0x584   : > { %p997_p3 = pneg %p996_p6 }
 0x586   : > { %p1002_p0 = pnand %p1000_p9, %p997_p3 }
 0x588   : > { %1005 = shalt.err (!%p1002_p0)
}
 0x589   : > { %s1079_s30 = smov 256   ;;  %s1080_s9 = smov 16  }
 0x58a   : > { %785 = dma.vmem_to_hbm [thread:$0]  (%p802_p5), %s605_s23, 512, %s1395_s3, [#allocation9], %s1079_s30, %s1079_s30, %s1080_s9  }
 0x58b   : > { %1039 = dma.done.wait (%p802_p5), [#allocation9], 512  }
 0x58c   : > { %1041 = vsyncadd (%p802_p5), [#allocation9], 4294966784 }
 0x58d PF: > { %s20_s20 = sadd.s32 1, %s1064_s20   ;;  %s1411_s15 = smov %s1048_s16 }
 0x58e   : > { %p17_p1 = scmp.ge.s32.totalorder %s20_s20, 4   ;;  %s1412_s16 = smov %s1052_s17 }
 0x58f   : > { %s1413_s17 = smov %s1153_s27  ;;  %s1414_s18 = smov %s1060_s19 }
 0x590   : > { %s1415_s19 = smov %s1417_s21  ;;  %19 = sbr.rel (!%p17_p1) target bundleno = 6 (0x6), region = 123 }
 0x597   :  { %632 = vsyncpa [#allocation8], 1 }
 0x598   :  { %634 = vsyncpa [#allocation8 + $0x1], 1 }
 0x599   :  { %635 = vsyncpa [#allocation11], 1 }
 0x59a   :  { %637 = vsyncpa [#allocation11 + $0x1], 1 }
 0x59b   :  { %638 = vsyncpa [#allocation9], 1 }
 0x59c   :  { %640 = vsyncpa [#allocation9 + $0x1], 1 }

</bundles_post_ra>
